<compile_context>
chip_gen: v7x
topology: tpu7x:2x2x1
jax: 0.10.0
libtpu: 0.0.40
codegen_flags: <defaults>
</compile_context>

<pallas_src>
import functools

import jax
import jax.numpy as jnp
from jax.experimental import pallas as pl
from jax.experimental.pallas import tpu as pltpu


def _tv_kernel(x_ref, acc_ref, *, n_planes, width, inv_count_h, inv_count_w,
               ragged):
    g = pl.program_id(0)

    @pl.when(g == 0)
    def _():
        acc_ref[...] = jnp.zeros_like(acc_ref)

    x = x_ref[...].astype(jnp.float32)                      # (P, L)
    P, L = x.shape

    if ragged:
        # Last block extends past N: zero stale/out-of-range plane rows once
        # on x (NaN-safe); diffs/squares of zeroed rows are then exactly 0.
        plane_ids = g * P + jax.lax.broadcasted_iota(jnp.int32, (P, 1), 0)
        x = jnp.where(plane_ids < n_planes, x, 0.0)

    # Static per-column scales: 1/count with the wrap/seam positions (last
    # row for the H-diff, last column of each row for the W-diff) zeroed.
    # Only (1, L) elements -> negligible vs. the (P, L) main work.
    col = jax.lax.broadcasted_iota(jnp.int32, (1, L), 1)
    scale_h = jnp.where(col < L - width, inv_count_h, 0.0)
    scale_w = jnp.where(col % width != width - 1, inv_count_w, 0.0)

    # Finite differences on the XLU (lane-aligned, no materialized
    # misaligned-slice copies).  roll(x, L - s)[i] == x[(i + s) mod L]; the
    # wrapped positions are exactly the ones zeroed by scale_h / scale_w.
    dh = pltpu.roll(x, L - width, axis=1) - x
    dw = pltpu.roll(x, L - 1, axis=1) - x
    contrib = dh * dh * scale_h + dw * dw * scale_w         # (P, L)

    A = acc_ref.shape[0]
    if A > 1:
        # P is a multiple of 8: reduce the plane axis in sublane-groups of 8
        # with pure elementwise vreg adds into the lane-dense (8, L) acc.
        acc_ref[...] += contrib.reshape(P // A, A, L).sum(axis=0)
    else:
        acc_ref[...] += jnp.sum(contrib, axis=0, keepdims=True)


def _vmem_limit_bytes():
    cap = None
    try:
        cap = int(pltpu.get_tpu_info().vmem_capacity_bytes)
    except Exception:
        cap = None
    if not cap or cap <= 0:
        cap = 64 * 1024 * 1024          # conservative: v7x per-TC physical
    # ~48 MiB scoped limit on v7x (64 MiB physical), ~96 MiB on v5e/v6e.
    return min((cap * 3) // 4, 96 * 1024 * 1024)


def l_tv_low(x, tv_loss_weight=5.0, max_planes_per_block=None):
    """JAX/Pallas equivalent of NuLiSNet.util.L_TV_low.forward (NCHW input)."""
    B, C, H, W = x.shape
    N = B * C
    L = H * W
    x2 = x.reshape(N, L)                 # row-major reshape: metadata only

    vmem_limit = _vmem_limit_bytes()

    # Block sizing on the f32 working set: double-buffered input block plus
    # ~5 live f32 temporaries (cast, two rolls, diffs / contrib).
    itemsize = jnp.dtype(x.dtype).itemsize
    bytes_per_plane = L * (2 * itemsize + 5 * 4)
    budget = (vmem_limit * 3) // 5
    planes_fit = max(1, budget // bytes_per_plane)
    if max_planes_per_block is not None:
        planes_fit = max(1, min(planes_fit, max_planes_per_block))

    if planes_fit >= N:
        P = N                            # full dim: always a legal block
    else:
        P = max(8, (planes_fit // 8) * 8)  # (8,128) rule: mult of 8 or == N
        if P > N:
            P = N
    # TODO(synk): if even an 8-plane block exceeds VMEM (huge planes),
    # intra-plane tiling of the L axis with a W-element halo is required.

    n_blocks = pl.cdiv(N, P)
    ragged = (n_blocks * P != N)
    acc_rows = 8 if (P % 8 == 0) else 1

    count_h = (H - 1) * W
    count_w = H * (W - 1)

    kernel = functools.partial(
        _tv_kernel,
        n_planes=N,
        width=W,
        inv_count_h=1.0 / count_h,
        inv_count_w=1.0 / count_w,
        ragged=ragged,
    )

    acc = pl.pallas_call(
        kernel,
        out_shape=jax.ShapeDtypeStruct((acc_rows, L), jnp.float32),
        grid_spec=pltpu.PrefetchScalarGridSpec(
            num_scalar_prefetch=0,
            grid=(n_blocks,),
            in_specs=[pl.BlockSpec((P, L), lambda g: (g, 0))],
            out_specs=pl.BlockSpec((acc_rows, L), lambda g: (0, 0)),
        ),
        compiler_params=pltpu.CompilerParams(
            # Single sequential reduction axis with a resident accumulator.
            # TODO(synk): add a pltpu.CORE_PARALLEL leading axis (one partial
            # accumulator per core) to use both v7x TensorCores.
            dimension_semantics=("arbitrary",),
            vmem_limit_bytes=vmem_limit,
        ),
    )(x2)

    # Single cross-lane reduction + scalar glue outside the kernel.  The
    # 1/count_h and 1/count_w factors were already folded in-kernel.
    return tv_loss_weight * jnp.sum(acc) / B


def _l_tv_low_ref(x, tv_loss_weight=5.0):
    B, C, H, W = x.shape
    xf = x.astype(jnp.float32)
    h_tv = jnp.sum((xf[:, :, 1:, :] - xf[:, :, :-1, :]) ** 2)
    w_tv = jnp.sum((xf[:, :, :, 1:] - xf[:, :, :, :-1]) ** 2)
    count_h = (H - 1) * W
    count_w = H * (W - 1)
    return tv_loss_weight * (h_tv / count_h + w_tv / count_w) / B


if __name__ == "__main__":
    # Small default shape: all 8 planes fit in a single plane block.
    x = jax.random.normal(jax.random.PRNGKey(0), (2, 4, 16, 16), jnp.float32)
    ref = jax.block_until_ready(_l_tv_low_ref(x))
    out = jax.block_until_ready(l_tv_low(x))
    assert jnp.allclose(out, ref, rtol=1e-4, atol=1e-5), (out, ref)

    # Larger plane count (N=21) exercises (a) the single-block path with a
    # non-multiple-of-8 accumulator and (b), with the forced small block,
    # the multi-block + ragged-last-block mask path.
    x2 = jax.random.normal(jax.random.PRNGKey(0), (3, 7, 16, 16), jnp.float32)
    ref2 = jax.block_until_ready(_l_tv_low_ref(x2))
    out2a = jax.block_until_ready(l_tv_low(x2))
    out2b = jax.block_until_ready(l_tv_low(x2, max_planes_per_block=8))
    assert jnp.allclose(out2a, ref2, rtol=1e-4, atol=1e-5), (out2a, ref2)
    assert jnp.allclose(out2b, ref2, rtol=1e-4, atol=1e-5), (out2b, ref2)

    print("KERNEL_OK")
</pallas_src>

<mosaic_0001>
module attributes {stable_mosaic.version = 11 : i64} {
  func.func @_tv_kernel(%arg0: i32, %arg1: memref<8x256xf32, #tpu.memory_space<vmem>>, %arg2: memref<8x256xf32, #tpu.memory_space<vmem>>) attributes {dimension_semantics = [#tpu.dimension_semantics<arbitrary>], iteration_bounds = array<i64: 1>, scalar_prefetch = 0 : i64, scratch_operands = 0 : i64, tpu.core_type = #tpu.core_type<tc>, window_params = [{transform_indices = @transform_0, window_bounds = array<i64: 8, 256>}, {pipeline_mode = #tpu.pipeline_mode<synchronous>, transform_indices = @transform_1, window_bounds = array<i64: 8, 256>}]} {
    %c0_i32 = arith.constant 0 : i32
    %0 = arith.cmpi eq, %arg0, %c0_i32 : i32
    %1 = arith.extui %0 : i1 to i32
    %c0_i32_0 = arith.constant 0 : i32
    %2 = arith.cmpi ne, %1, %c0_i32_0 : i32
    scf.if %2 {
      %cst_15 = arith.constant 0.000000e+00 : f32
      %47 = vector.broadcast %cst_15 : f32 to vector<8x256xf32>
      %c0_16 = arith.constant 0 : index
      %c0_17 = arith.constant 0 : index
      %48 = vector.load %arg2[%c0_16, %c0_17] : memref<8x256xf32, #tpu.memory_space<vmem>>, vector<8x256xf32>
      tpu.vector_store %arg2[%c0_16, %c0_17], %47 {strides = array<i32>} : memref<8x256xf32, #tpu.memory_space<vmem>>, vector<8x256xf32>,
    } else {
    }
    %c0 = arith.constant 0 : index
    %c0_1 = arith.constant 0 : index
    %3 = vector.load %arg1[%c0, %c0_1] : memref<8x256xf32, #tpu.memory_space<vmem>>, vector<8x256xf32>
    %4 = tpu.iota {dimensions = array<i32: 1>} : vector<1x256xi32>
    %c240_i32 = arith.constant 240 : i32
    %5 = vector.broadcast %c240_i32 : i32 to vector<1x256xi32>
    %6 = arith.cmpi slt, %4, %5 : vector<1x256xi32>
    %cst = arith.constant 0.00416666688 : f32
    %cst_2 = arith.constant 0.000000e+00 : f32
    %7 = vector.broadcast %cst : f32 to vector<1x256xf32>
    %8 = vector.broadcast %cst_2 : f32 to vector<1x256xf32>
    %9 = arith.select %6, %7, %8 : vector<1x256xi1>, vector<1x256xf32>
    %c16_i32 = arith.constant 16 : i32
    %c0_i32_3 = arith.constant 0 : i32
    %10 = arith.cmpi eq, %c16_i32, %c0_i32_3 : i32
    %c1_i32 = arith.constant 1 : i32
    %11 = arith.select %10, %c1_i32, %c16_i32 : i32
    %12 = vector.broadcast %11 : i32 to vector<1x256xi32>
    %13 = arith.remsi %4, %12 : vector<1x256xi32>
    %c0_i32_4 = arith.constant 0 : i32
    %14 = vector.broadcast %c0_i32_4 : i32 to vector<1x256xi32>
    %15 = arith.cmpi ne, %13, %14 : vector<1x256xi32>
    %c0_i32_5 = arith.constant 0 : i32
    %16 = vector.broadcast %c0_i32_5 : i32 to vector<1x256xi32>
    %17 = arith.cmpi slt, %13, %16 : vector<1x256xi32>
    %c0_i32_6 = arith.constant 0 : i32
    %18 = arith.cmpi slt, %11, %c0_i32_6 : i32
    %19 = vector.broadcast %18 : i1 to vector<1x256xi1>
    %20 = vector.broadcast %19 : vector<1x256xi1> to vector<1x256xi1>
    %21 = arith.xori %17, %20 : vector<1x256xi1>
    %22 = arith.andi %21, %15 : vector<1x256xi1>
    %23 = vector.broadcast %11 : i32 to vector<1x256xi32>
    %24 = arith.addi %13, %23 : vector<1x256xi32>
    %25 = arith.select %22, %24, %13 : vector<1x256xi1>, vector<1x256xi32>
    %c15_i32 = arith.constant 15 : i32
    %26 = vector.broadcast %c15_i32 : i32 to vector<1x256xi32>
    %27 = arith.cmpi ne, %25, %26 : vector<1x256xi32>
    %cst_7 = arith.constant 0.00416666688 : f32
    %cst_8 = arith.constant 0.000000e+00 : f32
    %28 = vector.broadcast %cst_7 : f32 to vector<1x256xf32>
    %29 = vector.broadcast %cst_8 : f32 to vector<1x256xf32>
    %30 = arith.select %27, %28, %29 : vector<1x256xi1>, vector<1x256xf32>
    %c240_i32_9 = arith.constant 240 : i32
    %31 = tpu.dynamic_rotate %3 by %c240_i32_9 dim 1 : vector<8x256xf32>, i32 -> vector<8x256xf32>
    %32 = arith.subf %31, %3 : vector<8x256xf32>
    %c255_i32 = arith.constant 255 : i32
    %33 = tpu.dynamic_rotate %3 by %c255_i32 dim 1 : vector<8x256xf32>, i32 -> vector<8x256xf32>
    %34 = arith.subf %33, %3 : vector<8x256xf32>
    %35 = arith.mulf %32, %32 : vector<8x256xf32>
    %36 = vector.broadcast %9 : vector<1x256xf32> to vector<8x256xf32>
    %37 = arith.mulf %35, %36 : vector<8x256xf32>
    %38 = arith.mulf %34, %34 : vector<8x256xf32>
    %39 = vector.broadcast %30 : vector<1x256xf32> to vector<8x256xf32>
    %40 = arith.mulf %38, %39 : vector<8x256xf32>
    %41 = arith.addf %37, %40 : vector<8x256xf32>
    %c0_10 = arith.constant 0 : index
    %c0_11 = arith.constant 0 : index
    %42 = vector.load %arg2[%c0_10, %c0_11] : memref<8x256xf32, #tpu.memory_space<vmem>>, vector<8x256xf32>
    %43 = vector.shape_cast %41 : vector<8x256xf32> to vector<1x8x256xf32>
    %cst_12 = arith.constant dense<0.000000e+00> : vector<8x256xf32>
    %44 = vector.multi_reduction <add>, %43, %cst_12 [0] : vector<1x8x256xf32> to vector<8x256xf32>
    %45 = arith.addf %42, %44 : vector<8x256xf32>
    %c0_13 = arith.constant 0 : index
    %c0_14 = arith.constant 0 : index
    %46 = vector.load %arg2[%c0_13, %c0_14] : memref<8x256xf32, #tpu.memory_space<vmem>>, vector<8x256xf32>
    tpu.vector_store %arg2[%c0_13, %c0_14], %45 {strides = array<i32>} : memref<8x256xf32, #tpu.memory_space<vmem>>, vector<8x256xf32>,
    return
  }
  func.func @transform_0(%arg0: i32) -> (i32, i32) {
    %c0_i32 = arith.constant 0 : i32
    %c0_i32_0 = arith.constant 0 : i32
    return %arg0, %c0_i32 : i32, i32
  }
  func.func @transform_1(%arg0: i32) -> (i32, i32) {
    %c0_i32 = arith.constant 0 : i32
    %c0_i32_0 = arith.constant 0 : i32
    %c0_i32_1 = arith.constant 0 : i32
    return %c0_i32, %c0_i32_0 : i32, i32
  }
}

</mosaic_0001>

<bundles_post_ra>
// kernel: tpu_custom_call.1
= control target key start
LH: loop header
LB: loop body
LE: loop exit
PB: predicated region body
PF: predicated region fallthrough
CT: control target
= control target key end

     0   :  { %6 = vsyncpa [#allocation3], 0  ;;  %s207_s0 = inlined_call_operand.hbm [shape: f32[8,256], index: 0, kind: input, shape index: {}]   ;;  %s208_s1 = inlined_call_operand.hbm [shape: f32[8,256], index: 1, kind: output, shape index: {}]  }
   0x1   :  { %7 = vsyncpa [#allocation4], 0  ;;  %s168_s6 = smov [#allocation2]   ;;  %s120_s10 = scalar_lea.hbm %s207_s0, 256 }
   0x2   :  { %s14_s7 = sshll.u32 %s168_s6, 4  ;;  %p121_p0 = scmp.ne.s32.totalorder %s207_s0, %s120_s10  ;;  %s15_s7 = int_to_ptr.vmem [resolvable:$true] %s14_s7 }
   0x3   :  { %p124_p1 = scmp.lt.u32.totalorder %s120_s10, %s207_s0 }
   0x5   :  { %p126_p2 = pnand %p124_p1, %p121_p0 }
   0x7   :  { %129 = shalt.err (!%p126_p2)
}
   0x8   :  { %s130_s15 = scalar_lea.vmem %s15_s7, 256  ;;  %p135_p4 = scmp.lt.s32.totalorder %s15_s7, %s15_s7 }
   0x9   :  { %p131_p3 = scmp.ne.s32.totalorder %s15_s7, %s130_s15  ;;  %p136_p5 = scmp.lt.s32.totalorder %s130_s15, %s130_s15 }
   0xb   :  { %p137_p6 = por %p136_p5, %p135_p4 }
   0xd   :  { %p138_p7 = pnand %p137_p6, %p131_p3 }
   0xf   :  { %141 = shalt.err (!%p138_p7)
}
  0x10   :  { %17 = dma.hbm_to_vmem [thread:$0]  %s207_s0, 256, %s15_s7, [#allocation3]  }
  0x11   :  { %164 = dma.done.wait [#allocation3], 256  }
  0x12   :  { %165 = vsyncadd [#allocation3], 4294967040  ;;  %v27_v0 = vld [vmem:[#allocation2] sm:$0xff]  ;;  %s169_s18 = smov 127   ;;  %s170_s19 = smov 112   ;;  %v28_v1 = vld [vmem:[#allocation2 + $0x8] sm:$0xff]  ;;  %v29_v2 = vlaneseq }
  0x13   :  { %73 = vrot.lane.b32.xlu1 %v27_v0, %s169_s18  ;;  %64 = vrot.lane.b32.xlu0 %v27_v0, %s170_s19  ;;  %v171_v19 = vmov 0.0   ;;  %s172_s0 = smov [#allocation5]  }
  0x14   :  { %v30_v3 = vand.u32 127, %v29_v2  ;;  %s106_s20 = sshll.u32 %s172_s0, 4  ;;  %s107_s20 = int_to_ptr.vmem [resolvable:$true] %s106_s20 }
  0x15   :  { %s142_s21 = scalar_lea.vmem %s107_s20, 256  ;;  %p147_p9 = scmp.lt.s32.totalorder %s107_s20, %s107_s20 }
  0x16   :  { %v31_v4 = vadd.s32 128, %v30_v3  ;;  %v40_v7 = vand.u32 15, %v30_v3  ;;  %vm77_vm0 = vcmp.lt.s32.totalorder %v30_v3, 127  ;;  %vm68_vm1 = vcmp.lt.s32.totalorder %v30_v3, 112  ;;  %p143_p8 = scmp.ne.s32.totalorder %s107_s20, %s142_s21  ;;  %p148_p10 = scmp.lt.s32.totalorder %s142_s21, %s142_s21 }
  0x17   :  { %75 = vrot.lane.b32.xlu1 %v28_v1, %s169_s18  ;;  %66 = vrot.lane.b32.xlu0 %v28_v1, %s170_s19 }
  0x18   :  { %v47_v8 = vand.u32 15, %v31_v4  ;;  %vm60_vm2 = vcmp.ne.s32.totalorder %v40_v7, 15  ;;  %vm33_vm4 = vcmp.lt.s32.totalorder %v31_v4, 240  ;;  %p149_p11 = por %p148_p10, %p147_p9 }
  0x19   :  { %v62_v20 = vsel %vm60_vm2, 0.004166667, %v171_v19  ;;  %v35_v22 = vsel %vm33_vm4, 0.004166667, %v171_v19 }
  0x1a   :  { %vm61_vm3 = vcmp.ne.s32.totalorder %v47_v8, 15  ;;  %p150_p12 = pnand %p149_p11, %p143_p8 }
  0x1b   :  { %v63_v21 = vsel %vm61_vm3, 0.004166667, %v171_v19 }
  0x85   :  { %v74_v5 = vpop.permute.xlu1 %73  ;;  %v65_v6 = vpop.permute.xlu0 %64 }
  0x89   :  { %v76_v9 = vpop.permute.xlu1 %75  ;;  %v67_v10 = vpop.permute.xlu0 %66 }
  0x8a   :  { %v78_v11 = vsel %vm77_vm0, %v74_v5, %v76_v9  ;;  %v79_v12 = vsel %vm77_vm0, %v76_v9, %v74_v5  ;;  %v69_v13 = vsel %vm68_vm1, %v65_v6, %v67_v10  ;;  %v70_v14 = vsel %vm68_vm1, %v67_v10, %v65_v6 }
  0x8b   :  { %v80_v15 = vsub.f32 %v78_v11, %v27_v0  ;;  %v81_v16 = vsub.f32 %v79_v12, %v28_v1  ;;  %v71_v17 = vsub.f32 %v69_v13, %v27_v0  ;;  %v72_v18 = vsub.f32 %v70_v14, %v28_v1 }
  0x8d   :  { %v86_v23 = vmul.f32 %v80_v15, %v80_v15  ;;  %v87_v24 = vmul.f32 %v81_v16, %v81_v16  ;;  %v82_v25 = vmul.f32 %v71_v17, %v71_v17  ;;  %v83_v26 = vmul.f32 %v72_v18, %v72_v18 }
  0x8f   :  { %v88_v27 = vmul.f32 %v86_v23, %v62_v20  ;;  %v89_v28 = vmul.f32 %v87_v24, %v63_v21  ;;  %v84_v29 = vmul.f32 0.004166667, %v82_v25  ;;  %v85_v30 = vmul.f32 %v83_v26, %v35_v22 }
  0x91   :  { %v90_v31 = vadd.f32 %v88_v27, %v84_v29  ;;  %v91_v32 = vadd.f32 %v89_v28, %v85_v30 }
  0x93   :  { %98 = vst [vmem:[#allocation5] sm:$0xff] %v90_v31  ;;  %99 = vst [vmem:[#allocation5 + $0x8] sm:$0xff] %v91_v32 }
  0x94   :  { %153 = shalt.err (!%p150_p12)
}
  0x95   :  { %s154_s24 = scalar_lea.hbm %s208_s1, 256 }
  0x96   :  { %p155_p13 = scmp.ne.s32.totalorder %s208_s1, %s154_s24  ;;  %p158_p0 = scmp.lt.u32.totalorder %s154_s24, %s208_s1 }
  0x98   :  { %p160_p1 = pnand %p158_p0, %p155_p13 }
  0x9a   :  { %163 = shalt.err (!%p160_p1)
}
  0x9b   :  { %109 = dma.vmem_to_hbm [thread:$0]  %s107_s20, 256, %s208_s1, [#allocation4]  }
  0x9c   :  { %166 = dma.done.wait [#allocation4], 256  }
  0x9d   :  { %167 = vsyncadd [#allocation4], 4294967040 }
  0x9e   :  { %113 = vsyncpa [#allocation3], 1 }
  0x9f   :  { %114 = vsyncpa [#allocation4], 1 }

</bundles_post_ra>
